<compile_context>
chip_gen: v6e
topology: v6e:2x2x1
jax: 0.10.0
libtpu: 0.0.40
codegen_flags: <defaults>
</compile_context>

<pallas_src>
import jax
import jax.numpy as jnp
from jax.experimental import pallas as pl
from jax.experimental.pallas import tpu as pltpu

BN_EPS = 1e-5
OUT_DIM = 40
HPAD = 128          # lane-dense width for the hidden layers


def _cdiv(a, b):
    return -(-a // b)


def mlp_forward(x, params, *, tm=2048, z0_vmem_budget=16 << 20):
    """x: (B, C, L) float32 -> (B, 40) float32."""
    (w0, b0, gamma, beta, w1, b1, w2, b2) = params
    del b0  # a bias immediately before BatchNorm cancels exactly (BN removes the batch mean)

    B = x.shape[0]
    x2d = x.reshape(B, -1).astype(jnp.float32)          # x.view(x.size(0), -1)
    D_in = x2d.shape[1]                                  # 64

    # ----- batch tiling: largest tile <= tm such that the last tile is dense ----
    nbt0 = max(1, _cdiv(B, int(tm)))
    TM = _cdiv(_cdiv(B, nbt0), 8) * 8                    # multiple of 8 sublanes
    nbt = _cdiv(B, TM)
    ragged = (B % TM) != 0                               # last tile has rows >= B

    # Resident layer-0 pre-activations if they fit the VMEM budget.
    z_bytes = nbt * TM * HPAD * 4
    keep_z0 = z_bytes <= int(z0_vmem_budget)

    # ----- lane-dense (128-wide) zero-padding of hidden-layer parameters --------
    # Padded lanes stay exactly zero through BN/ReLU/tanh, so the math is unchanged.
    w0p = jnp.pad(w0, ((0, 0), (0, HPAD - w0.shape[1])))                      # (64, 128)
    gp = jnp.pad(gamma, ((0, 0), (0, HPAD - gamma.shape[1])))                 # (1, 128)
    bep = jnp.pad(beta, ((0, 0), (0, HPAD - beta.shape[1])))                  # (1, 128)
    w1p = jnp.pad(w1, ((0, HPAD - w1.shape[0]), (0, HPAD - w1.shape[1])))     # (128, 128)
    b1p = jnp.pad(b1, ((0, 0), (0, HPAD - b1.shape[1])))                      # (1, 128)
    w2p = jnp.pad(w2, ((0, HPAD - w2.shape[0]), (0, 0)))                      # (128, 40)
    b2p = b2                                                                  # (1, 40)

    # ----- kernel ----------------------------------------------------------------
    def kernel(x_ref, w0_ref, g_ref, be_ref, w1_ref, b1_ref, w2_ref, b2_ref,
               out_ref, sum_ref, sq_ref, sc_ref, sh_ref, *maybe_z):
        z_ref = maybe_z[0] if keep_z0 else None
        p = pl.program_id(0)   # 0 = BN-stats pass, 1 = apply pass
        i = pl.program_id(1)   # batch tile index

        @pl.when((p == 0) & (i == 0))
        def _init():
            sum_ref[...] = jnp.zeros_like(sum_ref)
            sq_ref[...] = jnp.zeros_like(sq_ref)

        @pl.when(p == 0)
        def _stats():
            m = jnp.dot(x_ref[...], w0_ref[...],
                        preferred_element_type=jnp.float32)
            if ragged:
                # Mask garbage rows of the partial last tile out of the statistics.
                row = i * TM + jax.lax.broadcasted_iota(jnp.int32, (TM, 1), 0)
                m = jnp.where(row < B, m, 0.0)
            sum_ref[...] += jnp.sum(m, axis=0, keepdims=True)
            sq_ref[...] += jnp.sum(m * m, axis=0, keepdims=True)
            if keep_z0:
                z_ref[pl.ds(pl.multiple_of(i * TM, 8), TM), :] = m

        @pl.when((p == 1) & (i == 0))
        def _finalize_bn():
            inv_n = jnp.float32(1.0 / B)
            mean = sum_ref[...] * inv_n
            var = jnp.maximum(sq_ref[...] * inv_n - mean * mean, 0.0)  # biased var (torch BN train)
            scale = g_ref[...] * jax.lax.rsqrt(var + BN_EPS)
            sc_ref[...] = scale
            sh_ref[...] = be_ref[...] - mean * scale

        @pl.when(p == 1)
        def _apply():
            if keep_z0:
                m = z_ref[pl.ds(pl.multiple_of(i * TM, 8), TM), :]
            else:
                m = jnp.dot(x_ref[...], w0_ref[...],
                            preferred_element_type=jnp.float32)
            h = jnp.maximum(m * sc_ref[...] + sh_ref[...], 0.0)          # folded BN + ReLU
            h = jnp.tanh(jnp.dot(h, w1_ref[...],
                                 preferred_element_type=jnp.float32) + b1_ref[...])
            out_ref[...] = jnp.dot(h, w2_ref[...],
                                   preferred_element_type=jnp.float32) + b2_ref[...]

    # x is streamed per tile in pass 0; in pass 1 it is either pinned to tile 0
    # (resident-z0 path -> no second x stream) or streamed again (fallback).
    if keep_z0:
        x_map = lambda p, i: (i * (1 - p), 0)
    else:
        x_map = lambda p, i: (i, 0)

    scratch = [pltpu.VMEM((1, HPAD), jnp.float32)] * 4            # sum, sumsq, scale, shift
    if keep_z0:
        scratch.append(pltpu.VMEM((nbt * TM, HPAD), jnp.float32))  # resident layer-0 pre-acts

    # ----- cost hint for the XLA scheduler ---------------------------------------
    rows = nbt * TM
    flops = 2 * rows * D_in * HPAD                                  # layer-0 (stats pass)
    if not keep_z0:
        flops += 2 * rows * D_in * HPAD                             # layer-0 recompute
    flops += 2 * rows * (HPAD * HPAD + HPAD * OUT_DIM)              # layers 1 & 2
    transc = rows * HPAD + HPAD                                     # tanh + rsqrt
    x_reads = 1 if keep_z0 else 2
    bytes_acc = 4 * (x_reads * B * D_in + B * OUT_DIM
                     + D_in * HPAD + HPAD * HPAD + HPAD * OUT_DIM + 4 * HPAD + OUT_DIM)

    # ----- VMEM budget (v5e default scoped limit is only 16 MiB) -----------------
    tile_bytes = 2 * TM * D_in * 4 + 2 * TM * HPAD * 4              # double-buffered x + out
    param_bytes = 8 * (D_in * HPAD + HPAD * HPAD + HPAD * OUT_DIM + 4 * HPAD + OUT_DIM)
    vmem_limit = (z_bytes if keep_z0 else 0) + tile_bytes + param_bytes + (4 << 20)
    vmem_limit = int(min(max(vmem_limit, 16 << 20), 48 << 20))

    out = pl.pallas_call(
        kernel,
        out_shape=jax.ShapeDtypeStruct((B, OUT_DIM), jnp.float32),
        grid_spec=pltpu.PrefetchScalarGridSpec(
            num_scalar_prefetch=0,
            grid=(2, nbt),
            in_specs=[
                pl.BlockSpec((TM, D_in), x_map),                 # x tile (streams)
                pl.BlockSpec((D_in, HPAD), lambda p, i: (0, 0)),  # W0 (resident)
                pl.BlockSpec((1, HPAD), lambda p, i: (0, 0)),     # gamma
                pl.BlockSpec((1, HPAD), lambda p, i: (0, 0)),     # beta
                pl.BlockSpec((HPAD, HPAD), lambda p, i: (0, 0)),  # W1
                pl.BlockSpec((1, HPAD), lambda p, i: (0, 0)),     # b1
                pl.BlockSpec((HPAD, OUT_DIM), lambda p, i: (0, 0)),  # W2 (true output width)
                pl.BlockSpec((1, OUT_DIM), lambda p, i: (0, 0)),     # b2
            ],
            # i*p: constant block 0 during the stats pass (never written, never
            # flushed since the index does not change), then streams tile i in the
            # apply pass.  True-width (TM, 40) stores; partial last tile rows are
            # dropped by the block writeback.
            out_specs=pl.BlockSpec((TM, OUT_DIM), lambda p, i: (i * p, 0)),
            scratch_shapes=scratch,
        ),
        compiler_params=pltpu.CompilerParams(
            # Batch tiles feed shared BN-stats / scale-shift / z0 scratch, so both
            # axes are sequential.
            # TODO(synk): on v7x split the apply pass into its own pallas_call with
            #             a "parallel" batch axis to use the second TensorCore.
            dimension_semantics=("arbitrary", "arbitrary"),
            vmem_limit_bytes=vmem_limit,
        ),
        cost_estimate=pl.CostEstimate(
            flops=flops, transcendentals=transc, bytes_accessed=bytes_acc),
    )(x2d, w0p, gp, bep, w1p, b1p, w2p, b2p)

    return out


def make_params(key):
    """Deterministic synthetic parameters with the shapes the module implies."""
    d_in, d_h0, d_h1, d_out = 64, 32, 32, OUT_DIM
    ks = jax.random.split(key, 8)

    def lin(kw, kb, fan_in, fan_out):
        bound = 1.0 / jnp.sqrt(fan_in)
        # stored as (in, out): kernel computes x @ W
        w = jax.random.uniform(kw, (fan_in, fan_out), jnp.float32, -bound, bound)
        b = jax.random.uniform(kb, (1, fan_out), jnp.float32, -bound, bound)
        return w, b

    w0, b0 = lin(ks[0], ks[1], d_in, d_h0)
    w1, b1 = lin(ks[2], ks[3], d_h0, d_h1)
    w2, b2 = lin(ks[4], ks[5], d_h1, d_out)
    gamma = 1.0 + 0.1 * jax.random.normal(ks[6], (1, d_h0), jnp.float32)
    beta = 0.1 * jax.random.normal(ks[7], (1, d_h0), jnp.float32)
    return (w0, b0, gamma, beta, w1, b1, w2, b2)


def mlp_reference(x, params):
    """Plain-JAX reference for correctness check (faithful to the torch module)."""
    (w0, b0, gamma, beta, w1, b1, w2, b2) = params
    h = x.reshape(x.shape[0], -1) @ w0 + b0
    mean = h.mean(axis=0, keepdims=True)
    var = ((h - mean) ** 2).mean(axis=0, keepdims=True)
    h = (h - mean) / jnp.sqrt(var + BN_EPS) * gamma + beta
    h = jnp.maximum(h, 0.0)
    h = jnp.tanh(h @ w1 + b1)
    return h @ w2 + b2


if __name__ == "__main__":
    key = jax.random.PRNGKey(0)
    kx, kp, kx2 = jax.random.split(key, 3)
    params = make_params(kp)

    # Small shapes consistent with the module: (batch=2, channels=4, length=16) -> 64 features.
    x = jax.random.normal(kx, (2, 4, 16), jnp.float32)
    out = jax.block_until_ready(mlp_forward(x, params))
    ref = mlp_reference(x, params)
    assert out.shape == (2, OUT_DIM)
    assert jnp.allclose(out, ref, atol=1e-4, rtol=1e-4), "mismatch vs reference (B=2)"

    # Multiple batch tiles + ragged final tile, resident-z0 path.
    xb = jax.random.normal(kx2, (300, 4, 16), jnp.float32)
    outb = jax.block_until_ready(mlp_forward(xb, params, tm=128))
    refb = mlp_reference(xb, params)
    assert outb.shape == (300, OUT_DIM)
    assert jnp.allclose(outb, refb, atol=1e-4, rtol=1e-4), "mismatch vs reference (B=300)"

    # Same shapes, streaming fallback (z0 not kept resident) to exercise that path.
    outs = jax.block_until_ready(mlp_forward(xb, params, tm=128, z0_vmem_budget=0))
    assert jnp.allclose(outs, refb, atol=1e-4, rtol=1e-4), "mismatch vs reference (streaming)"

    print("KERNEL_OK")
</pallas_src>

<mosaic_0001>
module attributes {stable_mosaic.version = 11 : i64} {
  func.func @kernel(%arg0: i32, %arg1: i32, %arg2: memref<8x64xf32, #tpu.memory_space<vmem>>, %arg3: memref<64x128xf32, #tpu.memory_space<vmem>>, %arg4: memref<1x128xf32, #tpu.memory_space<vmem>>, %arg5: memref<1x128xf32, #tpu.memory_space<vmem>>, %arg6: memref<128x128xf32, #tpu.memory_space<vmem>>, %arg7: memref<1x128xf32, #tpu.memory_space<vmem>>, %arg8: memref<128x40xf32, #tpu.memory_space<vmem>>, %arg9: memref<1x40xf32, #tpu.memory_space<vmem>>, %arg10: memref<8x40xf32, #tpu.memory_space<vmem>>, %arg11: memref<1x128xf32, #tpu.memory_space<vmem>>, %arg12: memref<1x128xf32, #tpu.memory_space<vmem>>, %arg13: memref<1x128xf32, #tpu.memory_space<vmem>>, %arg14: memref<1x128xf32, #tpu.memory_space<vmem>>, %arg15: memref<8x128xf32, #tpu.memory_space<vmem>>) attributes {dimension_semantics = [#tpu.dimension_semantics<arbitrary>, #tpu.dimension_semantics<arbitrary>], iteration_bounds = array<i64: 2, 1>, scalar_prefetch = 0 : i64, scratch_operands = 5 : i64, tpu.core_type = #tpu.core_type<tc>, window_params = [{transform_indices = @transform_0, window_bounds = array<i64: 8, 64>}, {pipeline_mode = #tpu.pipeline_mode<synchronous>, transform_indices = @transform_1, window_bounds = array<i64: 64, 128>}, {pipeline_mode = #tpu.pipeline_mode<synchronous>, transform_indices = @transform_2, window_bounds = array<i64: 1, 128>}, {pipeline_mode = #tpu.pipeline_mode<synchronous>, transform_indices = @transform_3, window_bounds = array<i64: 1, 128>}, {pipeline_mode = #tpu.pipeline_mode<synchronous>, transform_indices = @transform_4, window_bounds = array<i64: 128, 128>}, {pipeline_mode = #tpu.pipeline_mode<synchronous>, transform_indices = @transform_5, window_bounds = array<i64: 1, 128>}, {pipeline_mode = #tpu.pipeline_mode<synchronous>, transform_indices = @transform_6, window_bounds = array<i64: 128, 40>}, {pipeline_mode = #tpu.pipeline_mode<synchronous>, transform_indices = @transform_7, window_bounds = array<i64: 1, 40>}, {transform_indices = @transform_8, window_bounds = array<i64: 8, 40>}]} {
    %c0_i32 = arith.constant 0 : i32
    %0 = arith.cmpi eq, %arg0, %c0_i32 : i32
    %c0_i32_0 = arith.constant 0 : i32
    %1 = arith.cmpi eq, %arg1, %c0_i32_0 : i32
    %2 = arith.andi %0, %1 : i1
    %3 = arith.extui %2 : i1 to i32
    %c0_i32_1 = arith.constant 0 : i32
    %4 = arith.cmpi ne, %3, %c0_i32_1 : i32
    scf.if %4 {
      %cst = arith.constant 0.000000e+00 : f32
      %16 = vector.broadcast %cst : f32 to vector<1x128xf32>
      %c0 = arith.constant 0 : index
      %c0_8 = arith.constant 0 : index
      %17 = vector.load %arg11[%c0, %c0_8] : memref<1x128xf32, #tpu.memory_space<vmem>>, vector<1x128xf32>
      tpu.vector_store %arg11[%c0, %c0_8], %16 {strides = array<i32>} : memref<1x128xf32, #tpu.memory_space<vmem>>, vector<1x128xf32>,
      %cst_9 = arith.constant 0.000000e+00 : f32
      %18 = vector.broadcast %cst_9 : f32 to vector<1x128xf32>
      %c0_10 = arith.constant 0 : index
      %c0_11 = arith.constant 0 : index
      %19 = vector.load %arg12[%c0_10, %c0_11] : memref<1x128xf32, #tpu.memory_space<vmem>>, vector<1x128xf32>
      tpu.vector_store %arg12[%c0_10, %c0_11], %18 {strides = array<i32>} : memref<1x128xf32, #tpu.memory_space<vmem>>, vector<1x128xf32>,
    } else {
    }
    %c0_i32_2 = arith.constant 0 : i32
    %5 = arith.cmpi eq, %arg0, %c0_i32_2 : i32
    %6 = arith.extui %5 : i1 to i32
    %c0_i32_3 = arith.constant 0 : i32
    %7 = arith.cmpi ne, %6, %c0_i32_3 : i32
    scf.if %7 {
      %c0 = arith.constant 0 : index
      %c0_8 = arith.constant 0 : index
      %16 = vector.load %arg2[%c0, %c0_8] : memref<8x64xf32, #tpu.memory_space<vmem>>, vector<8x64xf32>
      %c0_9 = arith.constant 0 : index
      %c0_10 = arith.constant 0 : index
      %17 = vector.load %arg3[%c0_9, %c0_10] : memref<64x128xf32, #tpu.memory_space<vmem>>, vector<64x128xf32>
      %cst = arith.constant dense<0.000000e+00> : vector<8x128xf32>
      %18 = tpu.matmul %16, %17, %cst {dimension_numbers = #tpu.dot_dimension_numbers<[1], [0], [0], [1], [0, 0, 1, 1], [], []>} : vector<8x64xf32>, vector<64x128xf32>, vector<8x128xf32> -> vector<8x128xf32>
      %c8_i32 = arith.constant 8 : i32
      %19 = arith.muli %arg1, %c8_i32 : i32
      %20 = tpu.iota {dimensions = array<i32: 0>} : vector<8x1xi32>
      %21 = vector.broadcast %19 : i32 to vector<8x1xi32>
      %22 = arith.addi %21, %20 : vector<8x1xi32>
      %c2_i32 = arith.constant 2 : i32
      %23 = vector.broadcast %c2_i32 : i32 to vector<8x1xi32>
      %24 = arith.cmpi slt, %22, %23 : vector<8x1xi32>
      %cst_11 = arith.constant 0.000000e+00 : f32
      %25 = vector.shape_cast %24 : vector<8x1xi1> to vector<8x1xi1>
      %26 = vector.broadcast %25 : vector<8x1xi1> to vector<8x128xi1>
      %27 = vector.broadcast %cst_11 : f32 to vector<8x128xf32>
      %28 = arith.select %26, %18, %27 : vector<8x128xi1>, vector<8x128xf32>
      %c0_12 = arith.constant 0 : index
      %c0_13 = arith.constant 0 : index
      %29 = vector.load %arg11[%c0_12, %c0_13] : memref<1x128xf32, #tpu.memory_space<vmem>>, vector<1x128xf32>
      %cst_14 = arith.constant dense<0.000000e+00> : vector<128xf32>
      %30 = vector.multi_reduction <add>, %28, %cst_14 [0] : vector<8x128xf32> to vector<128xf32>
      %31 = vector.shape_cast %30 : vector<128xf32> to vector<1x128xf32>
      %32 = arith.addf %29, %31 : vector<1x128xf32>
      %c0_15 = arith.constant 0 : index
      %c0_16 = arith.constant 0 : index
      %33 = vector.load %arg11[%c0_15, %c0_16] : memref<1x128xf32, #tpu.memory_space<vmem>>, vector<1x128xf32>
      tpu.vector_store %arg11[%c0_15, %c0_16], %32 {strides = array<i32>} : memref<1x128xf32, #tpu.memory_space<vmem>>, vector<1x128xf32>,
      %c0_17 = arith.constant 0 : index
      %c0_18 = arith.constant 0 : index
      %34 = vector.load %arg12[%c0_17, %c0_18] : memref<1x128xf32, #tpu.memory_space<vmem>>, vector<1x128xf32>
      %35 = arith.mulf %28, %28 : vector<8x128xf32>
      %cst_19 = arith.constant dense<0.000000e+00> : vector<128xf32>
      %36 = vector.multi_reduction <add>, %35, %cst_19 [0] : vector<8x128xf32> to vector<128xf32>
      %37 = vector.shape_cast %36 : vector<128xf32> to vector<1x128xf32>
      %38 = arith.addf %34, %37 : vector<1x128xf32>
      %c0_20 = arith.constant 0 : index
      %c0_21 = arith.constant 0 : index
      %39 = vector.load %arg12[%c0_20, %c0_21] : memref<1x128xf32, #tpu.memory_space<vmem>>, vector<1x128xf32>
      tpu.vector_store %arg12[%c0_20, %c0_21], %38 {strides = array<i32>} : memref<1x128xf32, #tpu.memory_space<vmem>>, vector<1x128xf32>,
      %c8_i32_22 = arith.constant 8 : i32
      %40 = arith.muli %arg1, %c8_i32_22 : i32
      %41 = tpu.assume_multiple %40, 8 : i32
      %42 = arith.index_cast %41 : i32 to index
      %c0_23 = arith.constant 0 : index
      %43 = vector.load %arg15[%42, %c0_23] : memref<8x128xf32, #tpu.memory_space<vmem>>, vector<8x128xf32>
      tpu.vector_store %arg15[%42, %c0_23], %28 {strides = array<i32>} : memref<8x128xf32, #tpu.memory_space<vmem>>, vector<8x128xf32>,
    } else {
    }
    %c1_i32 = arith.constant 1 : i32
    %8 = arith.cmpi eq, %arg0, %c1_i32 : i32
    %c0_i32_4 = arith.constant 0 : i32
    %9 = arith.cmpi eq, %arg1, %c0_i32_4 : i32
    %10 = arith.andi %8, %9 : i1
    %11 = arith.extui %10 : i1 to i32
    %c0_i32_5 = arith.constant 0 : i32
    %12 = arith.cmpi ne, %11, %c0_i32_5 : i32
    scf.if %12 {
      %c0 = arith.constant 0 : index
      %c0_8 = arith.constant 0 : index
      %16 = vector.load %arg11[%c0, %c0_8] : memref<1x128xf32, #tpu.memory_space<vmem>>, vector<1x128xf32>
      %cst = arith.constant 5.000000e-01 : f32
      %17 = vector.broadcast %cst : f32 to vector<1x128xf32>
      %18 = arith.mulf %16, %17 : vector<1x128xf32>
      %c0_9 = arith.constant 0 : index
      %c0_10 = arith.constant 0 : index
      %19 = vector.load %arg12[%c0_9, %c0_10] : memref<1x128xf32, #tpu.memory_space<vmem>>, vector<1x128xf32>
      %cst_11 = arith.constant 5.000000e-01 : f32
      %20 = vector.broadcast %cst_11 : f32 to vector<1x128xf32>
      %21 = arith.mulf %19, %20 : vector<1x128xf32>
      %22 = arith.mulf %18, %18 : vector<1x128xf32>
      %23 = arith.subf %21, %22 : vector<1x128xf32>
      %cst_12 = arith.constant 0.000000e+00 : f32
      %24 = vector.broadcast %cst_12 : f32 to vector<1x128xf32>
      %25 = arith.maximumf %23, %24 : vector<1x128xf32>
      %c0_13 = arith.constant 0 : index
      %c0_14 = arith.constant 0 : index
      %26 = vector.load %arg4[%c0_13, %c0_14] : memref<1x128xf32, #tpu.memory_space<vmem>>, vector<1x128xf32>
      %cst_15 = arith.constant 9.99999974E-6 : f32
      %27 = vector.broadcast %cst_15 : f32 to vector<1x128xf32>
      %28 = arith.addf %25, %27 : vector<1x128xf32>
      %29 = math.rsqrt %28 : vector<1x128xf32>
      %30 = arith.mulf %26, %29 : vector<1x128xf32>
      %c0_16 = arith.constant 0 : index
      %c0_17 = arith.constant 0 : index
      %31 = vector.load %arg13[%c0_16, %c0_17] : memref<1x128xf32, #tpu.memory_space<vmem>>, vector<1x128xf32>
      tpu.vector_store %arg13[%c0_16, %c0_17], %30 {strides = array<i32>} : memref<1x128xf32, #tpu.memory_space<vmem>>, vector<1x128xf32>,
      %c0_18 = arith.constant 0 : index
      %c0_19 = arith.constant 0 : index
      %32 = vector.load %arg5[%c0_18, %c0_19] : memref<1x128xf32, #tpu.memory_space<vmem>>, vector<1x128xf32>
      %33 = arith.mulf %18, %30 : vector<1x128xf32>
      %34 = arith.subf %32, %33 : vector<1x128xf32>
      %c0_20 = arith.constant 0 : index
      %c0_21 = arith.constant 0 : index
      %35 = vector.load %arg14[%c0_20, %c0_21] : memref<1x128xf32, #tpu.memory_space<vmem>>, vector<1x128xf32>
      tpu.vector_store %arg14[%c0_20, %c0_21], %34 {strides = array<i32>} : memref<1x128xf32, #tpu.memory_space<vmem>>, vector<1x128xf32>,
    } else {
    }
    %c1_i32_6 = arith.constant 1 : i32
    %13 = arith.cmpi eq, %arg0, %c1_i32_6 : i32
    %14 = arith.extui %13 : i1 to i32
    %c0_i32_7 = arith.constant 0 : i32
    %15 = arith.cmpi ne, %14, %c0_i32_7 : i32
    scf.if %15 {
      %c8_i32 = arith.constant 8 : i32
      %16 = arith.muli %arg1, %c8_i32 : i32
      %17 = tpu.assume_multiple %16, 8 : i32
      %18 = arith.index_cast %17 : i32 to index
      %c0 = arith.constant 0 : index
      %19 = vector.load %arg15[%18, %c0] : memref<8x128xf32, #tpu.memory_space<vmem>>, vector<8x128xf32>
      %c0_8 = arith.constant 0 : index
      %c0_9 = arith.constant 0 : index
      %20 = vector.load %arg13[%c0_8, %c0_9] : memref<1x128xf32, #tpu.memory_space<vmem>>, vector<1x128xf32>
      %21 = vector.broadcast %20 : vector<1x128xf32> to vector<8x128xf32>
      %22 = arith.mulf %19, %21 : vector<8x128xf32>
      %c0_10 = arith.constant 0 : index
      %c0_11 = arith.constant 0 : index
      %23 = vector.load %arg14[%c0_10, %c0_11] : memref<1x128xf32, #tpu.memory_space<vmem>>, vector<1x128xf32>
      %24 = vector.broadcast %23 : vector<1x128xf32> to vector<8x128xf32>
      %25 = arith.addf %22, %24 : vector<8x128xf32>
      %cst = arith.constant 0.000000e+00 : f32
      %26 = vector.broadcast %cst : f32 to vector<8x128xf32>
      %27 = arith.maximumf %25, %26 : vector<8x128xf32>
      %c0_12 = arith.constant 0 : index
      %c0_13 = arith.constant 0 : index
      %28 = vector.load %arg6[%c0_12, %c0_13] : memref<128x128xf32, #tpu.memory_space<vmem>>, vector<128x128xf32>
      %cst_14 = arith.constant dense<0.000000e+00> : vector<8x128xf32>
      %29 = tpu.matmul %27, %28, %cst_14 {dimension_numbers = #tpu.dot_dimension_numbers<[1], [0], [0], [1], [0, 0, 1, 1], [], []>} : vector<8x128xf32>, vector<128x128xf32>, vector<8x128xf32> -> vector<8x128xf32>
      %c0_15 = arith.constant 0 : index
      %c0_16 = arith.constant 0 : index
      %30 = vector.load %arg7[%c0_15, %c0_16] : memref<1x128xf32, #tpu.memory_space<vmem>>, vector<1x128xf32>
      %31 = vector.broadcast %30 : vector<1x128xf32> to vector<8x128xf32>
      %32 = arith.addf %29, %31 : vector<8x128xf32>
      %33 = math.tanh %32 : vector<8x128xf32>
      %c0_17 = arith.constant 0 : index
      %c0_18 = arith.constant 0 : index
      %34 = vector.load %arg8[%c0_17, %c0_18] : memref<128x40xf32, #tpu.memory_space<vmem>>, vector<128x40xf32>
      %cst_19 = arith.constant dense<0.000000e+00> : vector<8x40xf32>
      %35 = tpu.matmul %33, %34, %cst_19 {dimension_numbers = #tpu.dot_dimension_numbers<[1], [0], [0], [1], [0, 0, 1, 1], [], []>} : vector<8x128xf32>, vector<128x40xf32>, vector<8x40xf32> -> vector<8x40xf32>
      %c0_20 = arith.constant 0 : index
      %c0_21 = arith.constant 0 : index
      %36 = vector.load %arg9[%c0_20, %c0_21] : memref<1x40xf32, #tpu.memory_space<vmem>>, vector<1x40xf32>
      %37 = vector.broadcast %36 : vector<1x40xf32> to vector<8x40xf32>
      %38 = arith.addf %35, %37 : vector<8x40xf32>
      %c0_22 = arith.constant 0 : index
      %c0_23 = arith.constant 0 : index
      %39 = vector.load %arg10[%c0_22, %c0_23] : memref<8x40xf32, #tpu.memory_space<vmem>>, vector<8x40xf32>
      tpu.vector_store %arg10[%c0_22, %c0_23], %38 {strides = array<i32>} : memref<8x40xf32, #tpu.memory_space<vmem>>, vector<8x40xf32>,
    } else {
    }
    return
  }
  func.func @transform_0(%arg0: i32, %arg1: i32) -> (i32, i32) {
    %c1_i32 = arith.constant 1 : i32
    %0 = arith.subi %c1_i32, %arg0 : i32
    %1 = arith.muli %arg1, %0 : i32
    %c0_i32 = arith.constant 0 : i32
    %c0_i32_0 = arith.constant 0 : i32
    return %1, %c0_i32 : i32, i32
  }
  func.func @transform_1(%arg0: i32, %arg1: i32) -> (i32, i32) {
    %c0_i32 = arith.constant 0 : i32
    %c0_i32_0 = arith.constant 0 : i32
    %c0_i32_1 = arith.constant 0 : i32
    return %c0_i32, %c0_i32_0 : i32, i32
  }
  func.func @transform_2(%arg0: i32, %arg1: i32) -> (i32, i32) {
    %c0_i32 = arith.constant 0 : i32
    %c0_i32_0 = arith.constant 0 : i32
    %c0_i32_1 = arith.constant 0 : i32
    return %c0_i32, %c0_i32_0 : i32, i32
  }
  func.func @transform_3(%arg0: i32, %arg1: i32) -> (i32, i32) {
    %c0_i32 = arith.constant 0 : i32
    %c0_i32_0 = arith.constant 0 : i32
    %c0_i32_1 = arith.constant 0 : i32
    return %c0_i32, %c0_i32_0 : i32, i32
  }
  func.func @transform_4(%arg0: i32, %arg1: i32) -> (i32, i32) {
    %c0_i32 = arith.constant 0 : i32
    %c0_i32_0 = arith.constant 0 : i32
    %c0_i32_1 = arith.constant 0 : i32
    return %c0_i32, %c0_i32_0 : i32, i32
  }
  func.func @transform_5(%arg0: i32, %arg1: i32) -> (i32, i32) {
    %c0_i32 = arith.constant 0 : i32
    %c0_i32_0 = arith.constant 0 : i32
    %c0_i32_1 = arith.constant 0 : i32
    return %c0_i32, %c0_i32_0 : i32, i32
  }
  func.func @transform_6(%arg0: i32, %arg1: i32) -> (i32, i32) {
    %c0_i32 = arith.constant 0 : i32
    %c0_i32_0 = arith.constant 0 : i32
    %c0_i32_1 = arith.constant 0 : i32
    return %c0_i32, %c0_i32_0 : i32, i32
  }
  func.func @transform_7(%arg0: i32, %arg1: i32) -> (i32, i32) {
    %c0_i32 = arith.constant 0 : i32
    %c0_i32_0 = arith.constant 0 : i32
    %c0_i32_1 = arith.constant 0 : i32
    return %c0_i32, %c0_i32_0 : i32, i32
  }
  func.func @transform_8(%arg0: i32, %arg1: i32) -> (i32, i32) {
    %0 = arith.muli %arg1, %arg0 : i32
    %c0_i32 = arith.constant 0 : i32
    %c0_i32_0 = arith.constant 0 : i32
    return %0, %c0_i32 : i32, i32
  }
}

</mosaic_0001>

<bundles_post_ra>
// kernel: tpu_custom_call.1
= control target key start
LH: loop header
LB: loop body
LE: loop exit
PB: predicated region body
PF: predicated region fallthrough
CT: control target
= control target key end

     0   :  { %13 = vsyncpa [#allocation8], 0  ;;  %s1382_s0 = inlined_call_operand.vmem [shape: f32[2,64], index: 0, kind: input, shape index: {}]   ;;  %s1383_s1 = inlined_call_operand.hbm [shape: f32[64,128], index: 1, kind: input, shape index: {}]   ;;  %s1384_s2 = inlined_call_operand.vmem [shape: f32[1,128], index: 2, kind: input, shape index: {}]   ;;  %s1385_s3 = inlined_call_operand.vmem [shape: f32[1,128], index: 3, kind: input, shape index: {}]   ;;  %s1386_s4 = inlined_call_operand.vmem [shape: f32[128,128], index: 4, kind: input, shape index: {}]   ;;  %s1387_s5 = inlined_call_operand.vmem [shape: f32[1,128], index: 5, kind: input, shape index: {}]   ;;  %s1388_s6 = inlined_call_operand.vmem [shape: f32[128,40], index: 6, kind: input, shape index: {}]   ;;  %s1389_s7 = inlined_call_operand.vmem [shape: f32[1,40], index: 7, kind: input, shape index: {}]   ;;  %s1390_s8 = inlined_call_operand.hbm [shape: f32[2,40], index: 8, kind: output, shape index: {}]  }
   0x1   :  { %14 = vsyncpa [#allocation9], 0 }
   0x2   :  { %16 = vsyncpa [#allocation9 + $0x1], 0  ;;  %s1171_s27 = smov 0   ;;  %s1173_s28 = smov 0  }
   0x3   :  { %s1175_s29 = smov 0  }
   0x4 LB: > { %s825_s30 = sadd.s32 4294967295, %s1113_s29   ;;  %s826_s9 = sadd.s32 4294967294, %s1113_s29   ;;  %s1113_s29 = sphi %s1175_s29, %s22_s29   ;;  %s1109_s28 = sphi %s1173_s28, %s1394_s28   ;;  %s1105_s27 = sphi %s1171_s27, %s1393_s27  }
   0x5   : > { %s34_s10 = sadd.s32 1, %s1109_s28  ;;  %p827_p0 = scmp.ge.s32.totalorder %s1113_s29, 1 }
   0x6   : > { %p36_p1 = scmp.ge.s32.totalorder %s34_s10, 2  ;;  %p244_p2 = scmp.lt.s32.totalorder %s1113_s29, 3 }
   0x7   : > { %p1193_p3 = scmp.eq.s32.totalorder %s825_s30, 0  ;;  %s1115_s13 = smov [#allocation7]  }
   0x8   : > { %s1396_s10 = smov (%p36_p1, %s34_s10), 0  ;;  %p1199_p4 = pnand %p827_p0, %p244_p2 }
   0x9   : > { %s256_s14 = sshll.u32 %s1115_s13, 4  ;;  %s257_s14 = int_to_ptr.vmem [resolvable:$true] %s256_s14 }
   0xa   : > { %p986_p5 = pneg %p1199_p4  ;;  %s1048_s15 = scalar_lea.vmem %s257_s14, 1024 }
   0xb   : > { %p1049_p8 = scmp.ne.s32.totalorder %s257_s14, %s1048_s15  ;;  %p1056_p11 = scmp.lt.s32.totalorder %s257_s14, %s257_s14 }
   0xc   : > { %p987_p6 = pnand %p1193_p3, %p986_p5  ;;  %p1057_p12 = scmp.lt.s32.totalorder %s1048_s15, %s1048_s15 }
   0xe   : > { %p1039_p7 = pneg %p987_p6  ;;  %p1058_p13 = por %p1057_p12, %p1056_p11 }
  0x10   : > { %p1051_p9 = pnand %p1049_p8, %p1039_p7 }
  0x12   : > { %p1052_p10 = pneg %p1051_p9 }
  0x14   : > { %p1059_p0 = pnand %p1058_p13, %p1052_p10 }
  0x16   : > { %1062 = shalt.err (!%p1059_p0)
}
  0x17   : > { %s1116_s16 = smov 128   ;;  %s1117_s17 = smov 8  }
  0x18   : > { %989 = dma.hbm_to_vmem [thread:$0]  (!%p987_p6), %s1383_s1, 1024, %s257_s14, [#allocation8], %s1116_s16, %s1116_s16, %s1117_s17  }
  0x19   : > { %307 = sbr.rel (%p1199_p4) target bundleno = 774 (0x306), region = 52 }
  0x1e   : > { %1096 = dma.done.wait (%p1193_p3), [#allocation8], 1024  }
  0x1f   : > { %1098 = vsyncadd (%p1193_p3), [#allocation8], 4294966272  ;;  %p363_p1 = scmp.eq.s32.totalorder %s1105_s27, 0 }
  0x20   : > { %v1118_v0 = vmov (%p363_p1), 0.0  }
  0x21   : > { %368 = sbr.rel (!%p363_p1) target bundleno = 38 (0x26), region = 60  ;;  %369 = vst [vmem:[#allocation2] sm:$0x1] (%p363_p1), %v1118_v0  ;;  %370 = vst [vmem:[#allocation3] sm:$0x1] (%p363_p1), %v1118_v0 }
  0x26 PF: > { %p834_p2 = scmp.ne.s32.totalorder %s1105_s27, 0 }
  0x28   : > { %373 = sbr.rel (%p834_p2) target bundleno = 273 (0x111), region = 64 }
  0x2d   : > { %v382_v1 = vld [vmem:[#allocation7 + $0x38] sm:$0xff]  ;;  %v1119_v2 = vmov 0.0   ;;  %v381_v3 = vld [vmem:[#allocation7 + $0x30] sm:$0xff]  ;;  %vm1120_vm0 = vmmov 0   ;;  %v380_v4 = vld [vmem:[#allocation7 + $0x28] sm:$0xff]  ;;  %vm383_vm1 = vcmask 523264   ;;  %v458_v11 = vlaneseq }
  0x2e   : > { %891 = vmatprep.subr.mxu0 %v1119_v2  ;;  %907 = vmatprep.mubr.msk.f32.mxu0 %vm1120_vm0, %v1119_v2  ;;  %v379_v5 = vld [vmem:[#allocation7 + $0x20] sm:$0xff]  ;;  %v378_v6 = vld [vmem:[#allocation7 + $0x18] sm:$0xff]  ;;  %v377_v7 = vld [vmem:[#allocation7 + $0x10] sm:$0xff] }
  0x2f   : > { %892 = vmatpush3.msra.mxu0 %v382_v1  ;;  %v376_v8 = vld [vmem:[#allocation7 + $0x8] sm:$0xff]  ;;  %v375_v9 = vld [vmem:[#allocation7] sm:$0xff]  ;;  %v374_v10 = vld [vmem:[%s1382_s0] sm:$0xff]  ;;  %v459_v12 = vshrl.u32 %v458_v11, 7 }
  0x30   : > { %893 = vmatprep.subr.mxu0 %v1119_v2  ;;  %v466_v26 = vld [vmem:[#allocation2] sm:$0x1]  ;;  %v475_v29 = vld [vmem:[#allocation3] sm:$0x1] }
  0x31   : > { %894 = vmatpush3.msra.mxu0 %v381_v3  ;;  %vm462_vm2 = vcmp.lt.s32.totalorder %v459_v12, 2 }
  0x32   : > { %895 = vmatprep.subr.mxu0 %v1119_v2 }
  0x33   : > { %896 = vmatpush3.msra.mxu0 %v380_v4 }
  0x34   : > { %897 = vmatprep.subr.mxu0 %v1119_v2 }
  0x35   : > { %898 = vmatpush3.msra.mxu0 %v379_v5 }
  0x36   : > { %899 = vmatprep.subr.mxu0 %v1119_v2 }
  0x37   : > { %900 = vmatpush3.msra.mxu0 %v378_v6 }
  0x38   : > { %901 = vmatprep.subr.mxu0 %v1119_v2 }
  0x39   : > { %902 = vmatpush3.msra.mxu0 %v377_v7 }
  0x3a   : > { %903 = vmatprep.subr.mxu0 %v1119_v2 }
  0x3b   : > { %904 = vmatpush3.msra.mxu0 %v376_v8 }
  0x3c   : > { %905 = vmatprep.subr.mxu0 %v1119_v2 }
  0x3d   : > { %906 = vmatpush3.msra.mxu0 %v375_v9 }
  0x3e   : > { %908 = vmatmul.mubr.msk.f32.vlgmr.msra.gmra.mxu0 %vm383_vm1, %v374_v10 }
  0xfe   : > { %v453_v13 = vpop.f32.mrf.mxu0 }
  0xff   : > { %v465_v14 = vsel %vm462_vm2, %v453_v13, 0.0 }
 0x100   : > { %v467_v15 = vrot.slane %v465_v14, 4  ;;  %v476_v16 = vmul.f32 %v465_v14, %v465_v14  ;;  %486 = vst [vmem:[#allocation6] sm:$0xff] %v465_v14  ;;  %v909_v17 = vpop.f32.mrf.mxu0 }
 0x102   : > { %v468_v18 = vadd.f32 %v467_v15, %v465_v14  ;;  %v477_v19 = vrot.slane %v476_v16, 4 }
 0x104   : > { %v469_v20 = vrot.slane %v468_v18, 2  ;;  %v478_v21 = vadd.f32 %v477_v19, %v476_v16 }
 0x106   : > { %v470_v22 = vadd.f32 %v469_v20, %v468_v18  ;;  %v479_v23 = vrot.slane %v478_v21, 2 }
 0x108   : > { %v471_v24 = vrot.slane %v470_v22, 1  ;;  %v480_v25 = vadd.f32 %v479_v23, %v478_v21 }
 0x10a   : > { %v472_v27 = vadd.f32 %v471_v24, %v470_v22  ;;  %v481_v28 = vrot.slane %v480_v25, 1 }
 0x10c   : > { %v473_v30 = vadd.f32 %v472_v27, %v466_v26  ;;  %v482_v31 = vadd.f32 %v481_v28, %v480_v25 }
 0x10e   : > { %474 = vst [vmem:[#allocation2] sm:$0x1] %v473_v30  ;;  %v483_v32 = vadd.f32 %v482_v31, %v475_v29 }
 0x110   : > { %484 = vst [vmem:[#allocation3] sm:$0x1] %v483_v32 }
 0x111 PF: > { %p487_p3 = scmp.eq.s32.totalorder %s1105_s27, 1 }
 0x112   : > { %v499_v41 = vld [vmem:[%s1384_s2] sm:$0x1] (%p487_p3) }
 0x113   : > { %491 = sbr.rel (!%p487_p3) target bundleno = 309 (0x135), region = 68  ;;  %v504_v44 = vld [vmem:[%s1385_s3] sm:$0x1] (%p487_p3) }
 0x115   : > { %v492_v33 = vld [vmem:[#allocation2] sm:$0x1] (%p487_p3) }
 0x116   : > { %v493_v35 = vmul.f32 (%p487_p3), 0.5, %v492_v33 }
 0x117   : > { %v494_v34 = vld [vmem:[#allocation3] sm:$0x1] (%p487_p3) }
 0x118   : > { %v495_v36 = vmul.f32 0.5, %v494_v34  ;;  %v496_v37 = vmul.f32 %v493_v35, %v493_v35 }
 0x11a   : > { %v497_v38 = vsub.f32 %v495_v36, %v496_v37 }
 0x11c   : > { %v498_v39 = vmax.f32 %v497_v38, 0.0 }
 0x11e   : > { %v500_v40 = vadd.f32 1e-05, %v498_v39 }
 0x120   : > { %1033 = vrsqrt.f32 %v500_v40 }
 0x12d   : > { %v1034_v42 = vpop.eup %1033 }
 0x12e   : > { %v502_v43 = vmul.f32 %v1034_v42, %v499_v41 }
 0x130   : > { %503 = vst [vmem:[#allocation4] sm:$0x1] %v502_v43  ;;  %v505_v45 = vmul.f32 %v502_v43, %v493_v35 }
 0x132   : > { %v506_v46 = vsub.f32 %v504_v44, %v505_v45 }
 0x134   : > { %507 = vst [vmem:[#allocation5] sm:$0x1] %v506_v46 }
 0x135 PF: > { %p837_p4 = scmp.ne.s32.totalorder %s1105_s27, 1 }
 0x137   : > { %510 = sbr.rel (%p837_p4) target bundleno = 754 (0x2f2), region = 72 }
 0x13c   : > { %v546_v47 = vld [vmem:[%s1386_s4 + $0x78] sm:$0xff]  ;;  %v1121_v48 = vmov 0.0   ;;  %v545_v49 = vld [vmem:[%s1386_s4 + $0x70] sm:$0xff]  ;;  %vm1122_vm3 = vmmov 0   ;;  %v544_v50 = vld [vmem:[%s1386_s4 + $0x68] sm:$0xff]  ;;  %vm718_vm4 = vcmask 326656  }
 0x13d   : > { %910 = vmatprep.subr.mxu0 %v1121_v48  ;;  %942 = vmatprep.mubr.msk.f32.mxu0 %vm1122_vm3, %v1121_v48  ;;  %v543_v51 = vld [vmem:[%s1386_s4 + $0x60] sm:$0xff]  ;;  %v640_v52 = vld [vmem:[%s1388_s6 + $0x78] sm:$0xff]  ;;  %v639_v53 = vld [vmem:[%s1388_s6 + $0x70] sm:$0xff] }
 0x13e   : > { %911 = vmatpush3.msra.mxu0 %v546_v47  ;;  %945 = vmatprep.subr.mxu1 %v1121_v48  ;;  %v542_v54 = vld [vmem:[%s1386_s4 + $0x58] sm:$0xff]  ;;  %v638_v55 = vld [vmem:[%s1388_s6 + $0x68] sm:$0xff]  ;;  %v541_v56 = vld [vmem:[%s1386_s4 + $0x50] sm:$0xff] }
 0x13f   : > { %912 = vmatprep.subr.mxu0 %v1121_v48  ;;  %977 = vmatprep.mubr.msk.f32.mxu1 %vm1122_vm3, %v1121_v48  ;;  %v637_v57 = vld [vmem:[%s1388_s6 + $0x60] sm:$0xff]  ;;  %v540_v58 = vld [vmem:[%s1386_s4 + $0x48] sm:$0xff]  ;;  %v636_v59 = vld [vmem:[%s1388_s6 + $0x58] sm:$0xff] }
 0x140   : > { %913 = vmatpush3.msra.mxu0 %v545_v49  ;;  %946 = vmatpush3.msra.mxu1 %v640_v52  ;;  %v539_v60 = vld [vmem:[%s1386_s4 + $0x40] sm:$0xff]  ;;  %v635_v61 = vld [vmem:[%s1388_s6 + $0x50] sm:$0xff]  ;;  %v538_v62 = vld [vmem:[%s1386_s4 + $0x38] sm:$0xff] }
 0x141   : > { %914 = vmatprep.subr.mxu0 %v1121_v48  ;;  %947 = vmatprep.subr.mxu1 %v1121_v48  ;;  %v634_v63 = vld [vmem:[%s1388_s6 + $0x48] sm:$0xff]  ;;  %v537_v0 = vld [vmem:[%s1386_s4 + $0x30] sm:$0xff]  ;;  %v838_v2 = vld [vmem:[#allocation4] ss:$0 sm:$0xff] }
 0x142   : > { %915 = vmatpush3.msra.mxu0 %v544_v50  ;;  %948 = vmatpush3.msra.mxu1 %v639_v53  ;;  %v513_v1 = vld [vmem:[#allocation6] sm:$0xff]  ;;  %v839_v6 = vld [vmem:[#allocation5] ss:$0 sm:$0xff]  ;;  %v534_v7 = vld [vmem:[%s1386_s4 + $0x18] sm:$0xff] }
 0x143   : > { %916 = vmatprep.subr.mxu0 %v1121_v48  ;;  %949 = vmatprep.subr.mxu1 %v1121_v48  ;;  %v536_v3 = vld [vmem:[%s1386_s4 + $0x28] sm:$0xff]  ;;  %v535_v4 = vld [vmem:[%s1386_s4 + $0x20] sm:$0xff]  ;;  %v521_v5 = vmul.f32 %v838_v2, %v513_v1  ;;  %v533_v8 = vld [vmem:[%s1386_s4 + $0x10] sm:$0xff] }
 0x144   : > { %917 = vmatpush3.msra.mxu0 %v543_v51  ;;  %950 = vmatpush3.msra.mxu1 %v638_v55  ;;  %v532_v10 = vld [vmem:[%s1386_s4 + $0x8] sm:$0xff]  ;;  %v531_v11 = vld [vmem:[%s1386_s4] sm:$0xff]  ;;  %v632_v14 = vld [vmem:[%s1388_s6 + $0x38] sm:$0xff] }
 0x145   : > { %918 = vmatprep.subr.mxu0 %v1121_v48  ;;  %951 = vmatprep.subr.mxu1 %v1121_v48  ;;  %v529_v9 = vadd.f32 %v839_v6, %v521_v5  ;;  %v633_v13 = vld [vmem:[%s1388_s6 + $0x40] sm:$0xff]  ;;  %v631_v15 = vld [vmem:[%s1388_s6 + $0x30] sm:$0xff]  ;;  %v630_v16 = vld [vmem:[%s1388_s6 + $0x28] sm:$0xff] }
 0x146   : > { %919 = vmatpush3.msra.mxu0 %v542_v54  ;;  %952 = vmatpush3.msra.mxu1 %v637_v57  ;;  %v629_v17 = vld [vmem:[%s1388_s6 + $0x20] sm:$0xff]  ;;  %v628_v18 = vld [vmem:[%s1388_s6 + $0x18] sm:$0xff]  ;;  %v627_v19 = vld [vmem:[%s1388_s6 + $0x10] sm:$0xff] }
 0x147   : > { %920 = vmatprep.subr.mxu0 %v1121_v48  ;;  %953 = vmatprep.subr.mxu1 %v1121_v48  ;;  %v530_v12 = vmax.f32 %v529_v9, 0.0  ;;  %v626_v20 = vld [vmem:[%s1388_s6 + $0x8] sm:$0xff]  ;;  %v625_v21 = vld [vmem:[%s1388_s6] sm:$0xff] }
 0x148   : > { %921 = vmatpush3.msra.mxu0 %v541_v56  ;;  %954 = vmatpush3.msra.mxu1 %v636_v59  ;;  %v840_v22 = vld [vmem:[%s1387_s5] ss:$0 sm:$0xff] }
 0x149   : > { %922 = vmatprep.subr.mxu0 %v1121_v48  ;;  %955 = vmatprep.subr.mxu1 %v1121_v48  ;;  %v841_v27 = vld [vmem:[%s1389_s7] ss:$0 sm:$0xff] }
 0x14a   : > { %923 = vmatpush3.msra.mxu0 %v540_v58  ;;  %956 = vmatpush3.msra.mxu1 %v635_v61 }
 0x14b   : > { %924 = vmatprep.subr.mxu0 %v1121_v48  ;;  %957 = vmatprep.subr.mxu1 %v1121_v48 }
 0x14c   : > { %925 = vmatpush3.msra.mxu0 %v539_v60  ;;  %958 = vmatpush3.msra.mxu1 %v634_v63 }
 0x14d   : > { %926 = vmatprep.subr.mxu0 %v1121_v48  ;;  %959 = vmatprep.subr.mxu1 %v1121_v48 }
 0x14e   : > { %927 = vmatpush3.msra.mxu0 %v538_v62  ;;  %960 = vmatpush3.msra.mxu1 %v633_v13 }
 0x14f   : > { %928 = vmatprep.subr.mxu0 %v1121_v48  ;;  %961 = vmatprep.subr.mxu1 %v1121_v48 }
 0x150   : > { %929 = vmatpush3.msra.mxu0 %v537_v0  ;;  %962 = vmatpush3.msra.mxu1 %v632_v14 }
 0x151   : > { %930 = vmatprep.subr.mxu0 %v1121_v48  ;;  %963 = vmatprep.subr.mxu1 %v1121_v48 }
 0x152   : > { %931 = vmatpush3.msra.mxu0 %v536_v3  ;;  %964 = vmatpush3.msra.mxu1 %v631_v15 }
 0x153   : > { %932 = vmatprep.subr.mxu0 %v1121_v48  ;;  %965 = vmatprep.subr.mxu1 %v1121_v48 }
 0x154   : > { %933 = vmatpush3.msra.mxu0 %v535_v4  ;;  %966 = vmatpush3.msra.mxu1 %v630_v16 }
 0x155   : > { %934 = vmatprep.subr.mxu0 %v1121_v48  ;;  %967 = vmatprep.subr.mxu1 %v1121_v48 }
 0x156   : > { %935 = vmatpush3.msra.mxu0 %v534_v7  ;;  %968 = vmatpush3.msra.mxu1 %v629_v17 }
 0x157   : > { %936 = vmatprep.subr.mxu0 %v1121_v48  ;;  %969 = vmatprep.subr.mxu1 %v1121_v48 }
 0x158   : > { %937 = vmatpush3.msra.mxu0 %v533_v8  ;;  %970 = vmatpush3.msra.mxu1 %v628_v18 }
 0x159   : > { %938 = vmatprep.subr.mxu0 %v1121_v48  ;;  %971 = vmatprep.subr.mxu1 %v1121_v48 }
 0x15a   : > { %939 = vmatpush3.msra.mxu0 %v532_v10  ;;  %972 = vmatpush3.msra.mxu1 %v627_v19 }
 0x15b   : > { %940 = vmatprep.subr.mxu0 %v1121_v48  ;;  %973 = vmatprep.subr.mxu1 %v1121_v48 }
 0x15c   : > { %941 = vmatpush3.msra.mxu0 %v531_v11  ;;  %974 = vmatpush3.msra.mxu1 %v626_v20 }
 0x15d   : > { %943 = vmatmul.mubr.f32.vlgmr.msra.gmra.mxu0 %v530_v12  ;;  %975 = vmatprep.subr.mxu1 %v1121_v48 }
 0x15e   : > { %976 = vmatpush3.msra.mxu1 %v625_v21 }
 0x21d   : > { %v620_v23 = vpop.f32.mrf.mxu0 }
 0x21e   : > { %v621_v24 = vadd.f32 %v840_v22, %v620_v23 }
 0x21f   : > { %v944_v25 = vpop.f32.mrf.mxu0 }
 0x220   : > { %1035 = vtanh.f32 %v621_v24 }
 0x22d   : > { %v1036_v26 = vpop.eup %1035 }
 0x22e   : > { %978 = vmatmul.mubr.f32.vlgmr.msra.gmra.mxu1 %v1036_v26 }
 0x2ee   : > { %v714_v28 = vpop.f32.mrf.mxu1 }
 0x2ef   : > { %v715_v29 = vadd.f32 %v841_v27, %v714_v28 }
 0x2f0   : > { %v979_v30 = vpop.f32.mrf.mxu1 }
 0x2f1   : > { %719 = vst.msk [vmem:[#allocation10] sm:$0xff] %vm718_vm4, %v715_v29 }
 0x2f2 PF: > { %p842_p5 = scmp.ne.s32.totalorder %s825_s30, 1 }
 0x2f4   : > { %727 = sbr.rel (%p842_p5) target bundleno = 774 (0x306), region = 76 }
 0x2f9   : > { %734 = vsyncadd [#allocation9], 96  ;;  %s1123_s26 = smov [#allocation10]  }
 0x2fa   : > { %s739_s11 = sshll.u32 %s1123_s26, 4  ;;  %s740_s11 = int_to_ptr.vmem [resolvable:$true] %s739_s11 }
 0x2fb   : > { %s1063_s12 = scalar_lea.vmem %s740_s11, 32  ;;  %s1067_s13 = scalar_lea.vmem %s740_s11, 256 }
 0x2fc   : > { %p1064_p6 = scmp.ne.s32.totalorder %s740_s11, %s1063_s12  ;;  %p1068_p7 = scmp.lt.s32.totalorder %s740_s11, %s740_s11 }
 0x2fd   : > { %p1069_p8 = scmp.lt.s32.totalorder %s1067_s13, %s1063_s12 }
 0x2ff   : > { %p1070_p9 = por %p1069_p8, %p1068_p7 }
 0x301   : > { %p1071_p10 = pnand %p1070_p9, %p1064_p6 }
 0x303   : > { %1074 = shalt.err (!%p1071_p10)
}
 0x304   : > { %s1124_s27 = smov 32   ;;  %s1125_s14 = smov 2  }
 0x305   : > { %745 = dma.vmem_to_hbm [thread:$0]  %s740_s11, 32, %s1390_s8, [#allocation9], %s1124_s27, %s1124_s27, %s1125_s14  }
 0x306 PF: > { %p996_p11 = scmp.ge.s32.totalorder %s1113_s29, 2  ;;  %p997_p12 = scmp.eq.s32.totalorder %s826_s9, 1 }
 0x308   : > { %p991_p13 = pnand %p997_p12, %p996_p11 }
 0x30a   : > { %p992_p0 = pneg %p991_p13 }
 0x30c   : > { %1100 = dma.done.wait (%p992_p0), [#allocation9], 128  }
 0x30d   : > { %1102 = vsyncadd (%p992_p0), [#allocation9], 4294967168  ;;  %s22_s29 = sadd.s32 1, %s1113_s29   ;;  %s1393_s27 = smov %s1109_s28 }
 0x30e   : > { %p19_p1 = scmp.ge.s32.totalorder %s22_s29, 4   ;;  %s1394_s28 = smov %s1396_s10 }
 0x310   :  { %21 = sbr.rel (!%p19_p1) target bundleno = 4 (0x4), region = 110 }
 0x315   :  { %760 = vsyncpa [#allocation8], 1 }
 0x316   :  { %762 = vsyncpa [#allocation8 + $0x1], 1 }
 0x317   :  { %763 = vsyncpa [#allocation9], 1 }
 0x318   :  { %765 = vsyncpa [#allocation9 + $0x1], 1 }

</bundles_post_ra>
